<compile_context>
chip_gen: v6e
topology: v6e:2x2x1
jax: 0.10.0
libtpu: 0.0.40
codegen_flags: <defaults>
</compile_context>

<pallas_src>
import jax
import jax.numpy as jnp
from jax.experimental import pallas as pl
from jax.experimental.pallas import tpu as pltpu

_SUBLANE = 8
_MAX_TILE_B = 1024  # per-step batch tile (amortizes ~0.35us/step grid overhead)


def _round_up(n, m):
    return ((n + m - 1) // m) * m


def _mlp_kernel(x_ref, w1_ref, b1_ref, w2_ref, b2_ref, w3_ref, b3_ref, o_ref):
    # fc1 + ReLU (bf16 MXU inputs, f32 accumulation; bias/ReLU in f32)
    x = x_ref[...].astype(jnp.bfloat16)
    h1 = jnp.dot(x, w1_ref[...], preferred_element_type=jnp.float32)
    h1 = jnp.maximum(h1 + b1_ref[...], 0.0)
    # fc2 + ReLU
    h2 = jnp.dot(h1.astype(jnp.bfloat16), w2_ref[...],
                 preferred_element_type=jnp.float32)
    h2 = jnp.maximum(h2 + b2_ref[...], 0.0)
    # fc3: raw logits (CrossEntropyLoss expects raw logits).
    out = jnp.dot(h2.astype(jnp.bfloat16), w3_ref[...],
                  preferred_element_type=jnp.float32)
    o_ref[...] = (out + b3_ref[...]).astype(o_ref.dtype)


def _choose_tiling(B):
    """Pick (tile_b, B_pad, n_steps) with bounded padding waste."""
    n_steps = max(1, -(-B // _MAX_TILE_B))            # ceil-div
    tile_b = _round_up(-(-B // n_steps), _SUBLANE)    # 8-row aligned tile
    return tile_b, tile_b * n_steps, n_steps


def _mlp_forward_impl(x, prepared):
    """Fused MLP forward. x: (B, K) f32. prepared: output of prepare_params.
    Returns (B, O) f32 logits."""
    w1, b1, w2, b2, w3, b3 = prepared
    B, K = x.shape
    H1 = w1.shape[1]
    H2 = w2.shape[1]
    O = w3.shape[1]

    tile_b, B_pad, n_steps = _choose_tiling(B)
    # Only pad rows when needed (static shape decision; no-op for aligned B).
    xp = x if B_pad == B else jnp.zeros((B_pad, K), x.dtype).at[:B, :].set(x)

    stream = lambda i: (i, 0)   # activation/output tiles move with the grid
    const = lambda i: (0, 0)    # weights/biases stay VMEM-resident

    flops = 2 * B_pad * (K * H1 + H1 * H2 + H2 * O)
    bytes_accessed = (B_pad * K * 4 + B_pad * O * 4 +
                      (K * H1 + H1 * H2 + H2 * O) * 2 + (H1 + H2 + O) * 4)

    out_pad = pl.pallas_call(
        _mlp_kernel,
        out_shape=jax.ShapeDtypeStruct((B_pad, O), jnp.float32),
        grid=(n_steps,),
        in_specs=[
            pl.BlockSpec((tile_b, K), stream),   # x tile (full last dim, f32)
            pl.BlockSpec((K, H1), const),        # w1 (bf16, unpadded)
            pl.BlockSpec((1, H1), const),        # b1 (f32)
            pl.BlockSpec((H1, H2), const),       # w2 (bf16)
            pl.BlockSpec((1, H2), const),        # b2 (f32)
            pl.BlockSpec((H2, O), const),        # w3 (bf16, full last dim)
            pl.BlockSpec((1, O), const),         # b3 (f32)
        ],
        out_specs=pl.BlockSpec((tile_b, O), stream),
        compiler_params=pltpu.CompilerParams(
            dimension_semantics=("parallel",)),
        cost_estimate=pl.CostEstimate(flops=flops, transcendentals=0,
                                      bytes_accessed=bytes_accessed),
    )(xp, w1, b1, w2, b2, w3, b3)

    return out_pad if B_pad == B else out_pad[:B, :]


mlp_forward = jax.jit(_mlp_forward_impl)


def init_params(key, input_dim, hidden1, hidden2, output_dim):
    """Parameter init mimicking nn.Linear default (uniform +-1/sqrt(fan_in)).
    Weights stored transposed: (in_features, out_features), f32."""
    ks = jax.random.split(key, 6)

    def lin(kw, kb, fan_in, fan_out):
        bound = 1.0 / jnp.sqrt(float(fan_in))
        w = jax.random.uniform(kw, (fan_in, fan_out), jnp.float32, -bound, bound)
        b = jax.random.uniform(kb, (fan_out,), jnp.float32, -bound, bound)
        return w, b

    w1, b1 = lin(ks[0], ks[1], input_dim, hidden1)
    w2, b2 = lin(ks[2], ks[3], hidden1, hidden2)
    w3, b3 = lin(ks[4], ks[5], hidden2, output_dim)
    return (w1, b1, w2, b2, w3, b3)


def prepare_params(params):
    """One-time conversion to the kernel layout: bf16 weights (for MXU input),
    f32 row-vector biases. Call ONCE and reuse; keeps per-forward prep at zero."""
    w1, b1, w2, b2, w3, b3 = params
    prep = (
        w1.astype(jnp.bfloat16),
        b1.reshape(1, -1).astype(jnp.float32),
        w2.astype(jnp.bfloat16),
        b2.reshape(1, -1).astype(jnp.float32),
        w3.astype(jnp.bfloat16),
        b3.reshape(1, -1).astype(jnp.float32),
    )
    return jax.tree_util.tree_map(jax.device_put, prep)


if __name__ == "__main__":
    # Shapes implied by the script: wine_red.csv has 11 feature columns and
    # 6 distinct quality classes. Hidden sizes are the __init__ defaults (128).
    batch = 64
    input_dim = 11
    hidden1 = 128
    hidden2 = 128
    output_dim = 6

    key = jax.random.PRNGKey(0)
    kx, kp = jax.random.split(key)

    x = jax.random.normal(kx, (batch, input_dim), dtype=jnp.float32)
    # Preprocessing from the script (outside the module's forward):
    # torch.nn.functional.normalize(x, p=2.0, dim=0) -> L2-normalize each column.
    # NOTE: the original script applies this over the full dataset, not per batch.
    x = x / jnp.maximum(jnp.linalg.norm(x, axis=0, keepdims=True), 1e-12)

    params = init_params(kp, input_dim, hidden1, hidden2, output_dim)
    prepared = prepare_params(params)   # one-time host->device prep, hoisted

    logits = mlp_forward(x, prepared)
    jax.block_until_ready(logits)

    # Reference with the same bf16-input / f32-accumulate matmul contract.
    w1, b1, w2, b2, w3, b3 = params
    bf = jnp.bfloat16
    ref = jnp.maximum(
        jnp.dot(x.astype(bf), w1.astype(bf),
                preferred_element_type=jnp.float32) + b1.reshape(1, -1), 0.0)
    ref = jnp.maximum(
        jnp.dot(ref.astype(bf), w2.astype(bf),
                preferred_element_type=jnp.float32) + b2.reshape(1, -1), 0.0)
    ref = jnp.dot(ref.astype(bf), w3.astype(bf),
                  preferred_element_type=jnp.float32) + b3.reshape(1, -1)

    assert logits.shape == (batch, output_dim)
    max_err = float(jnp.max(jnp.abs(logits - ref)))
    assert jnp.allclose(logits, ref, atol=1e-3, rtol=1e-3), max_err

    print("KERNEL_OK")
</pallas_src>

<mosaic_0001>
module attributes {stable_mosaic.version = 11 : i64} {
  func.func @_mlp_kernel(%arg0: i32, %arg1: memref<64x11xf32, #tpu.memory_space<vmem>>, %arg2: memref<11x128xbf16, #tpu.memory_space<vmem>>, %arg3: memref<1x128xf32, #tpu.memory_space<vmem>>, %arg4: memref<128x128xbf16, #tpu.memory_space<vmem>>, %arg5: memref<1x128xf32, #tpu.memory_space<vmem>>, %arg6: memref<128x6xbf16, #tpu.memory_space<vmem>>, %arg7: memref<1x6xf32, #tpu.memory_space<vmem>>, %arg8: memref<64x6xf32, #tpu.memory_space<vmem>>) attributes {dimension_semantics = [#tpu.dimension_semantics<parallel>], iteration_bounds = array<i64: 1>, scalar_prefetch = 0 : i64, scratch_operands = 0 : i64, tpu.core_type = #tpu.core_type<tc>, window_params = [{transform_indices = @transform_0, window_bounds = array<i64: 64, 11>}, {pipeline_mode = #tpu.pipeline_mode<synchronous>, transform_indices = @transform_1, window_bounds = array<i64: 11, 128>}, {pipeline_mode = #tpu.pipeline_mode<synchronous>, transform_indices = @transform_2, window_bounds = array<i64: 1, 128>}, {pipeline_mode = #tpu.pipeline_mode<synchronous>, transform_indices = @transform_3, window_bounds = array<i64: 128, 128>}, {pipeline_mode = #tpu.pipeline_mode<synchronous>, transform_indices = @transform_4, window_bounds = array<i64: 1, 128>}, {pipeline_mode = #tpu.pipeline_mode<synchronous>, transform_indices = @transform_5, window_bounds = array<i64: 128, 6>}, {pipeline_mode = #tpu.pipeline_mode<synchronous>, transform_indices = @transform_6, window_bounds = array<i64: 1, 6>}, {transform_indices = @transform_7, window_bounds = array<i64: 64, 6>}]} {
    %c0 = arith.constant 0 : index
    %c0_0 = arith.constant 0 : index
    %0 = vector.load %arg1[%c0, %c0_0] : memref<64x11xf32, #tpu.memory_space<vmem>>, vector<64x11xf32>
    %1 = arith.truncf %0 : vector<64x11xf32> to vector<64x11xbf16>
    %c0_1 = arith.constant 0 : index
    %c0_2 = arith.constant 0 : index
    %2 = vector.load %arg2[%c0_1, %c0_2] : memref<11x128xbf16, #tpu.memory_space<vmem>>, vector<11x128xbf16>
    %cst = arith.constant dense<0.000000e+00> : vector<64x128xf32>
    %3 = tpu.matmul %1, %2, %cst {dimension_numbers = #tpu.dot_dimension_numbers<[1], [0], [0], [1], [0, 0, 1, 1], [], []>} : vector<64x11xbf16>, vector<11x128xbf16>, vector<64x128xf32> -> vector<64x128xf32>
    %c0_3 = arith.constant 0 : index
    %c0_4 = arith.constant 0 : index
    %4 = vector.load %arg3[%c0_3, %c0_4] : memref<1x128xf32, #tpu.memory_space<vmem>>, vector<1x128xf32>
    %5 = vector.broadcast %4 : vector<1x128xf32> to vector<64x128xf32>
    %6 = arith.addf %3, %5 : vector<64x128xf32>
    %cst_5 = arith.constant 0.000000e+00 : f32
    %7 = vector.broadcast %cst_5 : f32 to vector<64x128xf32>
    %8 = arith.maximumf %6, %7 : vector<64x128xf32>
    %9 = arith.truncf %8 : vector<64x128xf32> to vector<64x128xbf16>
    %c0_6 = arith.constant 0 : index
    %c0_7 = arith.constant 0 : index
    %10 = vector.load %arg4[%c0_6, %c0_7] : memref<128x128xbf16, #tpu.memory_space<vmem>>, vector<128x128xbf16>
    %cst_8 = arith.constant dense<0.000000e+00> : vector<64x128xf32>
    %11 = tpu.matmul %9, %10, %cst_8 {dimension_numbers = #tpu.dot_dimension_numbers<[1], [0], [0], [1], [0, 0, 1, 1], [], []>} : vector<64x128xbf16>, vector<128x128xbf16>, vector<64x128xf32> -> vector<64x128xf32>
    %c0_9 = arith.constant 0 : index
    %c0_10 = arith.constant 0 : index
    %12 = vector.load %arg5[%c0_9, %c0_10] : memref<1x128xf32, #tpu.memory_space<vmem>>, vector<1x128xf32>
    %13 = vector.broadcast %12 : vector<1x128xf32> to vector<64x128xf32>
    %14 = arith.addf %11, %13 : vector<64x128xf32>
    %cst_11 = arith.constant 0.000000e+00 : f32
    %15 = vector.broadcast %cst_11 : f32 to vector<64x128xf32>
    %16 = arith.maximumf %14, %15 : vector<64x128xf32>
    %17 = arith.truncf %16 : vector<64x128xf32> to vector<64x128xbf16>
    %c0_12 = arith.constant 0 : index
    %c0_13 = arith.constant 0 : index
    %18 = vector.load %arg6[%c0_12, %c0_13] : memref<128x6xbf16, #tpu.memory_space<vmem>>, vector<128x6xbf16>
    %cst_14 = arith.constant dense<0.000000e+00> : vector<64x6xf32>
    %19 = tpu.matmul %17, %18, %cst_14 {dimension_numbers = #tpu.dot_dimension_numbers<[1], [0], [0], [1], [0, 0, 1, 1], [], []>} : vector<64x128xbf16>, vector<128x6xbf16>, vector<64x6xf32> -> vector<64x6xf32>
    %c0_15 = arith.constant 0 : index
    %c0_16 = arith.constant 0 : index
    %20 = vector.load %arg7[%c0_15, %c0_16] : memref<1x6xf32, #tpu.memory_space<vmem>>, vector<1x6xf32>
    %21 = vector.broadcast %20 : vector<1x6xf32> to vector<64x6xf32>
    %22 = arith.addf %19, %21 : vector<64x6xf32>
    %c0_17 = arith.constant 0 : index
    %c0_18 = arith.constant 0 : index
    %23 = vector.load %arg8[%c0_17, %c0_18] : memref<64x6xf32, #tpu.memory_space<vmem>>, vector<64x6xf32>
    tpu.vector_store %arg8[%c0_17, %c0_18], %22 {strides = array<i32>} : memref<64x6xf32, #tpu.memory_space<vmem>>, vector<64x6xf32>,
    return
  }
  func.func @transform_0(%arg0: i32) -> (i32, i32) {
    %c0_i32 = arith.constant 0 : i32
    %c0_i32_0 = arith.constant 0 : i32
    return %arg0, %c0_i32 : i32, i32
  }
  func.func @transform_1(%arg0: i32) -> (i32, i32) {
    %c0_i32 = arith.constant 0 : i32
    %c0_i32_0 = arith.constant 0 : i32
    %c0_i32_1 = arith.constant 0 : i32
    return %c0_i32, %c0_i32_0 : i32, i32
  }
  func.func @transform_2(%arg0: i32) -> (i32, i32) {
    %c0_i32 = arith.constant 0 : i32
    %c0_i32_0 = arith.constant 0 : i32
    %c0_i32_1 = arith.constant 0 : i32
    return %c0_i32, %c0_i32_0 : i32, i32
  }
  func.func @transform_3(%arg0: i32) -> (i32, i32) {
    %c0_i32 = arith.constant 0 : i32
    %c0_i32_0 = arith.constant 0 : i32
    %c0_i32_1 = arith.constant 0 : i32
    return %c0_i32, %c0_i32_0 : i32, i32
  }
  func.func @transform_4(%arg0: i32) -> (i32, i32) {
    %c0_i32 = arith.constant 0 : i32
    %c0_i32_0 = arith.constant 0 : i32
    %c0_i32_1 = arith.constant 0 : i32
    return %c0_i32, %c0_i32_0 : i32, i32
  }
  func.func @transform_5(%arg0: i32) -> (i32, i32) {
    %c0_i32 = arith.constant 0 : i32
    %c0_i32_0 = arith.constant 0 : i32
    %c0_i32_1 = arith.constant 0 : i32
    return %c0_i32, %c0_i32_0 : i32, i32
  }
  func.func @transform_6(%arg0: i32) -> (i32, i32) {
    %c0_i32 = arith.constant 0 : i32
    %c0_i32_0 = arith.constant 0 : i32
    %c0_i32_1 = arith.constant 0 : i32
    return %c0_i32, %c0_i32_0 : i32, i32
  }
  func.func @transform_7(%arg0: i32) -> (i32, i32) {
    %c0_i32 = arith.constant 0 : i32
    %c0_i32_0 = arith.constant 0 : i32
    return %arg0, %c0_i32 : i32, i32
  }
}

</mosaic_0001>

<bundles_post_ra>
// kernel: _mlp_forward_impl.1
= control target key start
LH: loop header
LB: loop body
LE: loop exit
PB: predicated region body
PF: predicated region fallthrough
CT: control target
= control target key end

     0   :  { %vm66_vm0 = vcmask 1044480   ;;  %vm67_vm1 = vcmask 1045504   ;;  %v576_v1 = vmov 65535   ;;  %vm53_vm2 = vcmask 89088   ;;  %s737_s1 = inlined_call_operand.vmem [shape: bf16[11,128], index: 1, kind: input, shape index: {}]   ;;  %s738_s0 = inlined_call_operand.vmem [shape: f32[64,11], index: 0, kind: input, shape index: {}]   ;;  %s739_s3 = inlined_call_operand.vmem [shape: bf16[128,128], index: 3, kind: input, shape index: {}]   ;;  %s740_s5 = inlined_call_operand.vmem [shape: bf16[128,6], index: 5, kind: input, shape index: {}]   ;;  %s741_s2 = inlined_call_operand.vmem [shape: f32[1,128], index: 2, kind: input, shape index: {}]   ;;  %s742_s4 = inlined_call_operand.vmem [shape: f32[1,128], index: 4, kind: input, shape index: {}]   ;;  %s743_s6 = inlined_call_operand.vmem [shape: f32[1,6], index: 6, kind: input, shape index: {}]   ;;  %s744_s7 = inlined_call_operand.vmem [shape: f32[64,6], index: 7, kind: output, shape index: {}]  }
   0x1   :  { %v559_v0 = vld [vmem:[%s737_s1] sm:$0x3f]   ;;  %v68_v2 = vsel %vm66_vm0, 4294967295, %v576_v1  ;;  %v28_v4 = vld [vmem:[%s738_s0 + $0x8] sm:$0xff]  ;;  %v29_v7 = vld [vmem:[%s738_s0 + $0x10] sm:$0xff]  ;;  %vm434_vm3 = vcmask 48128  }
   0x2   :  { %v27_v3 = vld [vmem:[%s738_s0] sm:$0xff]  ;;  %v69_v5 = vsel %vm67_vm1, %v68_v2, 0  ;;  %v30_v8 = vld [vmem:[%s738_s0 + $0x18] sm:$0xff]  ;;  %v32_v11 = vld [vmem:[%s738_s0 + $0x28] sm:$0xff] }
   0x3   :  { %v35_v6 = vpack.c.bf16 %v28_v4, %v27_v3  ;;  %v71_v9 = vand.u32 %v559_v0, %v69_v5  ;;  %v31_v10 = vld [vmem:[%s738_s0 + $0x20] sm:$0xff]  ;;  %v560_v12 = vld [vmem:[%s739_s3 + $0x38] sm:$0xff]   ;;  %v36_v13 = vpack.c.bf16 %v30_v8, %v29_v7  ;;  %v561_v14 = vld [vmem:[%s739_s3 + $0x30] sm:$0xff]  }
   0x4   :  { %v37_v15 = vpack.c.bf16 %v32_v11, %v31_v10  ;;  %510 = vmatprep.subr.bf16.mxu1 %v560_v12  ;;  %v33_v16 = vld [vmem:[%s738_s0 + $0x30] sm:$0xff]  ;;  %v562_v17 = vld [vmem:[%s739_s3 + $0x28] sm:$0xff]   ;;  %v34_v18 = vld [vmem:[%s738_s0 + $0x38] sm:$0xff] }
   0x5   :  { %502 = vmatprep.mubr.msk.bf16.mxu0 %vm53_vm2, %v35_v6  ;;  %500 = vmatprep.subr.bf16.mxu0 %v71_v9  ;;  %v563_v19 = vld [vmem:[%s739_s3 + $0x20] sm:$0xff]   ;;  %v38_v20 = vpack.c.bf16 %v34_v18, %v33_v16  ;;  %v564_v21 = vld [vmem:[%s739_s3 + $0x18] sm:$0xff]   ;;  %v565_v22 = vld [vmem:[%s739_s3 + $0x10] sm:$0xff]  }
   0x6   :  { %501 = vmatpush3.bf16.msra.mxu0 %v71_v9  ;;  %511 = vmatpush3.bf16.msra.mxu1 %v560_v12  ;;  %v566_v23 = vld [vmem:[%s739_s3 + $0x8] sm:$0xff]   ;;  %v567_v24 = vld [vmem:[%s739_s3] sm:$0xff]   ;;  %v568_v25 = vld [vmem:[%s740_s5 + $0x38] sm:$0xff]  }
   0x7   :  { %512 = vmatprep.subr.bf16.mxu1 %v561_v14  ;;  %v569_v26 = vld [vmem:[%s740_s5 + $0x30] sm:$0xff]   ;;  %534 = vmatprep.subr.bf16.mxu0 %v568_v25  ;;  %v570_v27 = vld [vmem:[%s740_s5 + $0x28] sm:$0xff]   ;;  %v571_v28 = vld [vmem:[%s740_s5 + $0x20] sm:$0xff]  }
   0x8   :  { %v572_v29 = vld [vmem:[%s740_s5 + $0x18] sm:$0xff]   ;;  %v447_v32 = vld [vmem:[%s741_s2] ss:$0 sm:$0xff]  ;;  %v573_v59 = vld [vmem:[%s740_s5 + $0x10] sm:$0xff]  }
   0x9   :  { %503 = vmatmul.mubr.msk.bf16.vlgmr.msra.gmra.mxu0 %vm53_vm2, %v36_v13  ;;  %v574_v60 = vld [vmem:[%s740_s5 + $0x8] sm:$0xff]   ;;  %v575_v61 = vld [vmem:[%s740_s5] sm:$0xff]  }
   0xa   :  { %506 = vmatprep.mubr.msk.bf16.mxu0 %vm53_vm2, %v37_v15  ;;  %513 = vmatpush3.bf16.msra.mxu1 %v561_v14  ;;  %v453_v0 = vld [vmem:[%s742_s4] ss:$0 sm:$0xff] }
   0xb   :  { %514 = vmatprep.subr.bf16.mxu1 %v562_v17  ;;  %535 = vmatpush3.bf16.msra.mxu0 %v568_v25 }
   0xc   :  { %536 = vmatprep.subr.bf16.mxu0 %v569_v26 }
   0xe   :  { %515 = vmatpush3.bf16.msra.mxu1 %v562_v17 }
   0xf   :  { %516 = vmatprep.subr.bf16.mxu1 %v563_v19  ;;  %537 = vmatpush3.bf16.msra.mxu0 %v569_v26 }
  0x10   :  { %538 = vmatprep.subr.bf16.mxu0 %v570_v27 }
  0x11   :  { %507 = vmatmul.mubr.msk.bf16.gmra.mxu0 %vm53_vm2, %v38_v20 }
  0x12   :  { %517 = vmatpush3.bf16.msra.mxu1 %v563_v19 }
  0x13   :  { %518 = vmatprep.subr.bf16.mxu1 %v564_v21  ;;  %539 = vmatpush3.bf16.msra.mxu0 %v570_v27  ;;  %v462_v27 = vld [vmem:[%s743_s6] ss:$0 sm:$0xff] }
  0x14   :  { %540 = vmatprep.subr.bf16.mxu0 %v571_v28 }
  0x16   :  { %519 = vmatpush3.bf16.msra.mxu1 %v564_v21 }
  0x17   :  { %520 = vmatprep.subr.bf16.mxu1 %v565_v22  ;;  %541 = vmatpush3.bf16.msra.mxu0 %v571_v28 }
  0x18   :  { %542 = vmatprep.subr.bf16.mxu0 %v572_v29 }
  0x1a   :  { %521 = vmatpush3.bf16.msra.mxu1 %v565_v22 }
  0x1b   :  { %522 = vmatprep.subr.bf16.mxu1 %v566_v23  ;;  %543 = vmatpush3.bf16.msra.mxu0 %v572_v29 }
  0x1c   :  { %544 = vmatprep.subr.bf16.mxu0 %v573_v59 }
  0x1e   :  { %523 = vmatpush3.bf16.msra.mxu1 %v566_v23 }
  0x1f   :  { %524 = vmatprep.subr.bf16.mxu1 %v567_v24  ;;  %545 = vmatpush3.bf16.msra.mxu0 %v573_v59 }
  0x20   :  { %546 = vmatprep.subr.bf16.mxu0 %v574_v60 }
  0x22   :  { %525 = vmatpush3.bf16.msra.mxu1 %v567_v24 }
  0x23   :  { %547 = vmatpush3.bf16.msra.mxu0 %v574_v60 }
  0x24   :  { %548 = vmatprep.subr.bf16.mxu0 %v575_v61 }
  0x27   :  { %549 = vmatpush3.bf16.msra.mxu0 %v575_v61 }
  0xc9   :  { %v504_v30 = vpop.f32.mrf.mxu0 }
  0xca   :  { %v116_v36 = vadd.f32 %v504_v30, %v447_v32 }
  0xcb   :  { %v107_v31 = vpop.f32.mrf.mxu0 }
  0xcc   :  { %v108_v34 = vadd.f32 %v447_v32, %v107_v31  ;;  %v140_v43 = vmax.f32 %v116_v36, 0.0 }
  0xcd   :  { %v505_v33 = vpop.f32.mrf.mxu0 }
  0xce   :  { %v119_v35 = vadd.f32 %v505_v33, %v447_v32  ;;  %v138_v41 = vmax.f32 %v108_v34, 0.0 }
  0xcf   :  { %v110_v37 = vpop.f32.mrf.mxu0 }
  0xd0   :  { %v111_v38 = vadd.f32 %v447_v32, %v110_v37  ;;  %v141_v39 = vmax.f32 %v119_v35, 0.0 }
  0xd1   :  { %v508_v40 = vpop.f32.mrf.mxu0 }
  0xd2   :  { %v139_v42 = vmax.f32 %v111_v38, 0.0  ;;  %v147_v46 = vpack.c.bf16 %v141_v39, %v140_v43  ;;  %v132_v50 = vadd.f32 %v508_v40, %v447_v32 }
  0xd3   :  { %v123_v44 = vpop.f32.mrf.mxu0 }
  0xd4   :  { %v146_v45 = vpack.c.bf16 %v139_v42, %v138_v41  ;;  %v124_v48 = vadd.f32 %v447_v32, %v123_v44  ;;  %v144_v56 = vmax.f32 %v132_v50, 0.0 }
  0xd5   :  { %v509_v47 = vpop.f32.mrf.mxu0 }
  0xd6   :  { %v135_v49 = vadd.f32 %v509_v47, %v447_v32  ;;  %526 = vmatprep.mubr.bf16.mxu1 %v146_v45  ;;  %v142_v54 = vmax.f32 %v124_v48, 0.0 }
  0xd7   :  { %v126_v51 = vpop.f32.mrf.mxu0  ;;  %527 = vmatmul.mubr.bf16.vlgmr.msra.gmra.mxu1 %v147_v46 }
  0xd8   :  { %v127_v52 = vadd.f32 %v447_v32, %v126_v51  ;;  %v145_v53 = vmax.f32 %v135_v49, 0.0 }
  0xda   :  { %v143_v55 = vmax.f32 %v127_v52, 0.0  ;;  %v149_v58 = vpack.c.bf16 %v145_v53, %v144_v56 }
  0xdc   :  { %v148_v57 = vpack.c.bf16 %v143_v55, %v142_v54 }
  0xde   :  { %530 = vmatprep.mubr.bf16.mxu1 %v148_v57 }
  0xdf   :  { %531 = vmatmul.mubr.bf16.gmra.mxu1 %v149_v58 }
 0x197   :  { %v528_v62 = vpop.f32.mrf.mxu1 }
 0x198   :  { %v264_v4 = vadd.f32 %v528_v62, %v453_v0 }
 0x199   :  { %v255_v63 = vpop.f32.mrf.mxu1 }
 0x19a   :  { %v256_v2 = vadd.f32 %v453_v0, %v255_v63  ;;  %v288_v11 = vmax.f32 %v264_v4, 0.0 }
 0x19b   :  { %v529_v1 = vpop.f32.mrf.mxu1 }
 0x19c   :  { %v267_v3 = vadd.f32 %v529_v1, %v453_v0  ;;  %v286_v9 = vmax.f32 %v256_v2, 0.0 }
 0x19d   :  { %v258_v5 = vpop.f32.mrf.mxu1 }
 0x19e   :  { %v259_v6 = vadd.f32 %v453_v0, %v258_v5  ;;  %v289_v7 = vmax.f32 %v267_v3, 0.0 }
 0x19f   :  { %v532_v8 = vpop.f32.mrf.mxu1 }
 0x1a0   :  { %v287_v10 = vmax.f32 %v259_v6, 0.0  ;;  %v295_v14 = vpack.c.bf16 %v289_v7, %v288_v11  ;;  %v280_v18 = vadd.f32 %v532_v8, %v453_v0 }
 0x1a1   :  { %v271_v12 = vpop.f32.mrf.mxu1 }
 0x1a2   :  { %v294_v13 = vpack.c.bf16 %v287_v10, %v286_v9  ;;  %v272_v16 = vadd.f32 %v453_v0, %v271_v12  ;;  %v292_v24 = vmax.f32 %v280_v18, 0.0 }
 0x1a3   :  { %v533_v15 = vpop.f32.mrf.mxu1 }
 0x1a4   :  { %v283_v17 = vadd.f32 %v533_v15, %v453_v0  ;;  %550 = vmatprep.mubr.bf16.mxu0 %v294_v13  ;;  %v290_v22 = vmax.f32 %v272_v16, 0.0 }
 0x1a5   :  { %v274_v19 = vpop.f32.mrf.mxu1  ;;  %551 = vmatmul.mubr.bf16.vlgmr.msra.gmra.mxu0 %v295_v14 }
 0x1a6   :  { %v275_v20 = vadd.f32 %v453_v0, %v274_v19  ;;  %v293_v21 = vmax.f32 %v283_v17, 0.0 }
 0x1a8   :  { %v291_v23 = vmax.f32 %v275_v20, 0.0  ;;  %v297_v26 = vpack.c.bf16 %v293_v21, %v292_v24 }
 0x1aa   :  { %v296_v25 = vpack.c.bf16 %v291_v23, %v290_v22 }
 0x1ac   :  { %554 = vmatprep.mubr.bf16.mxu0 %v296_v25 }
 0x1ad   :  { %555 = vmatmul.mubr.bf16.gmra.mxu0 %v297_v26 }
 0x265   :  { %v552_v28 = vpop.f32.mrf.mxu0 }
 0x266   :  { %v412_v29 = vadd.f32 %v552_v28, %v462_v27 }
 0x267   :  { %v403_v30 = vpop.f32.mrf.mxu0 }
 0x268   :  { %437 = vst.msk [vmem:[%s744_s7 + $0x10] sm:$0xff] %vm434_vm3, %v412_v29  ;;  %v404_v31 = vadd.f32 %v462_v27, %v403_v30 }
 0x269   :  { %v553_v32 = vpop.f32.mrf.mxu0 }
 0x26a   :  { %435 = vst.msk [vmem:[%s744_s7] sm:$0xff] %vm434_vm3, %v404_v31  ;;  %v415_v33 = vadd.f32 %v553_v32, %v462_v27 }
 0x26b   :  { %v406_v34 = vpop.f32.mrf.mxu0 }
 0x26c   :  { %438 = vst.msk [vmem:[%s744_s7 + $0x18] sm:$0xff] %vm434_vm3, %v415_v33  ;;  %v407_v35 = vadd.f32 %v462_v27, %v406_v34 }
 0x26d   :  { %v556_v36 = vpop.f32.mrf.mxu0 }
 0x26e   :  { %436 = vst.msk [vmem:[%s744_s7 + $0x8] sm:$0xff] %vm434_vm3, %v407_v35  ;;  %v428_v37 = vadd.f32 %v556_v36, %v462_v27 }
 0x26f   :  { %v419_v38 = vpop.f32.mrf.mxu0 }
 0x270   :  { %441 = vst.msk [vmem:[%s744_s7 + $0x30] sm:$0xff] %vm434_vm3, %v428_v37  ;;  %v420_v39 = vadd.f32 %v462_v27, %v419_v38 }
 0x271   :  { %v557_v40 = vpop.f32.mrf.mxu0 }
 0x272   :  { %439 = vst.msk [vmem:[%s744_s7 + $0x20] sm:$0xff] %vm434_vm3, %v420_v39  ;;  %v431_v41 = vadd.f32 %v557_v40, %v462_v27 }
 0x273   :  { %v422_v42 = vpop.f32.mrf.mxu0 }
 0x274   :  { %442 = vst.msk [vmem:[%s744_s7 + $0x38] sm:$0xff] %vm434_vm3, %v431_v41  ;;  %v423_v43 = vadd.f32 %v462_v27, %v422_v42 }
 0x276   :  { %440 = vst.msk [vmem:[%s744_s7 + $0x28] sm:$0xff] %vm434_vm3, %v423_v43 }

</bundles_post_ra>
